<compile_context>
chip_gen: v7x
topology: tpu7x:2x2x1
jax: 0.10.0
libtpu: 0.0.40
codegen_flags: <defaults>
</compile_context>

<pallas_src>
import functools

import jax
import jax.numpy as jnp
import numpy as np
from jax.experimental import pallas as pl
from jax.experimental.pallas import tpu as pltpu


def _round_up(x, m):
    return ((x + m - 1) // m) * m


# --------------------------------------------------------------------------- #
# Kernel
# --------------------------------------------------------------------------- #
def _mlp_multiobj_kernel(
    x_ref,        # (B_TILE, T*C) : input block, batch on sublanes (no HBM transpose)
    w1_ref,       # (H*T, T*C)    : block-Toeplitz conv1 weights (time padding folded in)
    w2_ref,       # (H, H*T)      : conv2 weights, h-major / t-minor flattening
    wh_ref,       # (Fp, H)       : [coeff*I_K | 0 ; 0 | coeff*w3] fused head
    scores_ref,   # (Fp, B_TILE)  : lane-dense outputs (batch on lanes)
    logits_ref,   # (Kp, B_TILE)
    *,
    k_pad,
    use_sigmoid_restriction,
    use_final_activation,
    matmul_dtype,
):
    x = x_ref[...].astype(matmul_dtype)

    # conv1 (+ implicit zero time padding) as ONE block-Toeplitz contraction.
    # Contract the LAST axes of both operands (w1[h*T+t_out, t_in*C+c] with
    # x[b, t_in*C+c]) so the MXU consumes the (B_TILE, T*C) block directly;
    # the batch-to-lanes relayout happens on-chip, never as an HBM transpose.
    h1 = jax.lax.dot_general(
        w1_ref[...], x,
        dimension_numbers=(((1,), (1,)), ((), ())),
        preferred_element_type=jnp.float32)            # (H*T, B_TILE)
    h1 = jnp.maximum(h1, 0.0)

    # conv2 = full contraction over (h, t); h1 rows already match w2's layout.
    emb = jnp.dot(w2_ref[...], h1.astype(matmul_dtype),
                  preferred_element_type=jnp.float32)  # (H, B_TILE)
    emb = jnp.maximum(emb, 0.0)

    # Supervised identity block + unsupervised linear head in one tiny matmul;
    # sigmoid_eccentricity_coeff is pre-folded into wh (scores path only).
    pre = jnp.dot(wh_ref[...], emb,
                  preferred_element_type=jnp.float32)  # (Fp, B_TILE)

    if use_sigmoid_restriction:
        scores_ref[...] = jax.nn.sigmoid(pre)
    else:
        scores_ref[...] = pre

    # Logits come straight from emb (8-aligned sublane slice): exact reference
    # values, independent of the head matmul's rounding.
    lg = emb[:k_pad, :]
    if use_final_activation and use_sigmoid_restriction:
        lg = jax.nn.sigmoid(lg)
    logits_ref[...] = lg


# --------------------------------------------------------------------------- #
# One-time parameter packing (hoisted out of the per-forward path)
# --------------------------------------------------------------------------- #
def pack_mlp_params(
    params,
    *,
    num_series,
    num_in_timesteps,
    num_factor_scores,
    num_out_classes,
    hidden,
    use_sigmoid_restriction,
    sigmoid_eccentricity_coeff=10.0,
    matmul_dtype=jnp.float32,
):
    C, T, H = num_series, num_in_timesteps, hidden
    K, F = num_out_classes, num_factor_scores
    tkw = T - (T - 1) % 2
    pad = tkw // 2
    Fp = _round_up(max(F, 8), 8)

    w1 = jnp.asarray(params["w1"], jnp.float32)        # (H, 1, C, tkw) torch OIHW
    w2 = jnp.asarray(params["w2"], jnp.float32)        # (H, H, 1, T)
    w3 = params.get("w3", None)

    # conv1 + zero time padding folded into a block-Toeplitz matrix whose
    # columns are t-major / c-minor, matching the free (B,T,C)->(B,T*C) reshape
    # of the input:
    #   W[h*T + t_out, t_in*C + c] = w1[h, 0, c, t_in - t_out + pad]  (tap in range)
    w1_hck = w1[:, 0]                                  # (H, C, tkw)
    t_out = jnp.arange(T)[:, None]
    t_in = jnp.arange(T)[None, :]
    k_idx = t_in - t_out + pad                         # (T_out, T_in)
    valid = ((k_idx >= 0) & (k_idx < tkw)).astype(jnp.float32)
    k_cl = jnp.clip(k_idx, 0, tkw - 1)
    toep = w1_hck[:, :, k_cl] * valid[None, None]      # (H, C, T_out, T_in)
    toep = jnp.transpose(toep, (0, 2, 3, 1))           # (H, T_out, T_in, C)
    w1_toep = toep.reshape(H * T, T * C).astype(matmul_dtype)

    # conv2 flattened h-major / t-minor to match h1's row ordering exactly.
    w2_flat = w2[:, :, 0, :].reshape(H, H * T).astype(matmul_dtype)

    # Fused head: identity for the K supervised outputs, w3 for the rest;
    # sigmoid eccentricity coeff pre-folded (only scores go through this head).
    wh = jnp.zeros((Fp, H), jnp.float32)
    wh = wh.at[:K, :K].set(jnp.eye(K, dtype=jnp.float32))
    if F - K > 0:
        wh = wh.at[K:F, K:H].set(jnp.asarray(w3, jnp.float32))
    if use_sigmoid_restriction:
        wh = wh * jnp.float32(sigmoid_eccentricity_coeff)

    return {"w1_toep": w1_toep, "w2_flat": w2_flat, "wh": wh}


# --------------------------------------------------------------------------- #
# Forward (jittable): thin wrapper around one pallas_call
# --------------------------------------------------------------------------- #
def mlp_classifier_forward(
    X,
    packed,
    *,
    num_series,
    num_in_timesteps,
    num_factor_scores,
    num_out_classes,
    hidden,
    use_sigmoid_restriction,
    use_final_activation=True,
    matmul_dtype=jnp.float32,
):
    B = X.shape[0]
    C, T, H = num_series, num_in_timesteps, hidden
    K, F = num_out_classes, num_factor_scores
    TC, HT = T * C, H * T
    Fp = _round_up(max(F, 8), 8)
    Kp = _round_up(max(K, 8), 8)
    assert Kp <= H, "num_out_classes (padded to 8) must not exceed hidden size"

    # ---- batch tiling: batch lives on the 128-lane axis of every matmul out.
    # Per-grid-step overhead (~0.35 us) dominates at small tiles, so grow the
    # tile with B; for large B keep >= 2 tiles so v7x megacore has work.
    B_TILE_CAP = 2048           # h1 temp = HT*B_TILE*4B = 4 MiB at 2048 -> tiny vs any VMEM limit
    if B <= 512:
        B_TILE = _round_up(max(B, 128), 128)            # one tile, 128..512 lanes
    else:
        n_min = max(2, pl.cdiv(B, B_TILE_CAP))          # >= 2 tiles (v7x 2 TCs)
        B_TILE = min(B_TILE_CAP, _round_up(pl.cdiv(B, n_min), 128))
    n_tiles = pl.cdiv(B, B_TILE)
    B_pad = n_tiles * B_TILE

    # Input: (B, T, C) -> (B, T*C) is a FREE row-major reshape (no relayout).
    x = jnp.asarray(X, jnp.float32).reshape(B, TC)
    if B_pad != B:
        # Linear zero-pad copy, only when B is not tile-aligned.
        # TODO(synk): rely on ragged last-block support to drop this copy too.
        x = jnp.pad(x, ((0, B_pad - B), (0, 0)))

    kernel = functools.partial(
        _mlp_multiobj_kernel,
        k_pad=Kp,
        use_sigmoid_restriction=use_sigmoid_restriction,
        use_final_activation=use_final_activation,
        matmul_dtype=matmul_dtype,
    )

    wbytes = jnp.dtype(matmul_dtype).itemsize
    cost = pl.CostEstimate(
        flops=2 * B_pad * (HT * TC + H * HT + Fp * H),
        transcendentals=(B_pad * (Fp + Kp)) if use_sigmoid_restriction else 0,
        bytes_accessed=(4 * B_pad * TC + wbytes * (HT * TC + H * HT)
                        + 4 * Fp * H + 4 * (Fp + Kp) * B_pad),
    )

    scores_slab, logits_slab = pl.pallas_call(
        kernel,
        out_shape=(
            jax.ShapeDtypeStruct((Fp, B_pad), jnp.float32),
            jax.ShapeDtypeStruct((Kp, B_pad), jnp.float32),
        ),
        grid_spec=pltpu.PrefetchScalarGridSpec(
            num_scalar_prefetch=0,
            grid=(n_tiles,),
            in_specs=[
                pl.BlockSpec((B_TILE, TC), lambda bt: (bt, 0)),   # batch-tiled input
                pl.BlockSpec((HT, TC), lambda bt: (0, 0)),        # weights: constant
                pl.BlockSpec((H, HT), lambda bt: (0, 0)),         # index maps, stay
                pl.BlockSpec((Fp, H), lambda bt: (0, 0)),         # VMEM-resident
            ],
            out_specs=[
                pl.BlockSpec((Fp, B_TILE), lambda bt: (0, bt)),   # lane-dense slabs
                pl.BlockSpec((Kp, B_TILE), lambda bt: (0, bt)),
            ],
        ),
        compiler_params=pltpu.CompilerParams(
            dimension_semantics=("parallel",)),
        cost_estimate=cost,
    )(x, packed["w1_toep"], packed["w2_flat"], packed["wh"])

    # Lane-dense slabs -> (B, F) / (B, K); tiny transposes, fused under jit.
    return scores_slab[:F, :B].T, logits_slab[:K, :B].T


def make_mlp_classifier(
    params,
    *,
    num_series,
    num_in_timesteps,
    num_factor_scores,
    num_out_classes,
    hidden,
    use_sigmoid_restriction,
    sigmoid_eccentricity_coeff=10.0,
    use_final_activation=True,
    matmul_dtype=jnp.float32,
):
    """Packs weights ONCE (Toeplitz build, conv2 flatten, fused head, coeff
    folding) and returns a jitted forward(X) -> (scores, logits)."""
    packed = pack_mlp_params(
        params,
        num_series=num_series, num_in_timesteps=num_in_timesteps,
        num_factor_scores=num_factor_scores, num_out_classes=num_out_classes,
        hidden=hidden, use_sigmoid_restriction=use_sigmoid_restriction,
        sigmoid_eccentricity_coeff=sigmoid_eccentricity_coeff,
        matmul_dtype=matmul_dtype)

    fwd = functools.partial(
        mlp_classifier_forward,
        packed=packed,
        num_series=num_series, num_in_timesteps=num_in_timesteps,
        num_factor_scores=num_factor_scores, num_out_classes=num_out_classes,
        hidden=hidden, use_sigmoid_restriction=use_sigmoid_restriction,
        use_final_activation=use_final_activation, matmul_dtype=matmul_dtype)
    return jax.jit(fwd)


# --------------------------------------------------------------------------- #
# Pure-JAX reference (mirrors the PyTorch forward) for correctness checking
# --------------------------------------------------------------------------- #
def reference_forward(
    X,
    params,
    *,
    num_series,
    num_in_timesteps,
    num_factor_scores,
    num_out_classes,
    hidden,
    use_sigmoid_restriction,
    sigmoid_eccentricity_coeff=10.0,
    use_final_activation=True,
):
    B = X.shape[0]
    tkw = num_in_timesteps - (num_in_timesteps - 1) % 2
    pad = tkw // 2
    x = jnp.transpose(X, (0, 2, 1)).reshape(B, 1, num_series, num_in_timesteps)
    h = jax.lax.conv_general_dilated(
        x, params["w1"], (1, 1), ((0, 0), (pad, pad)),
        dimension_numbers=("NCHW", "OIHW", "NCHW"),
        precision=jax.lax.Precision.HIGHEST)
    h = jax.nn.relu(h)
    h = jax.lax.conv_general_dilated(
        h, params["w2"], (1, 1), "VALID",
        dimension_numbers=("NCHW", "OIHW", "NCHW"),
        precision=jax.lax.Precision.HIGHEST)
    h = jax.nn.relu(h).reshape(B, -1)
    sup = h[:, :num_out_classes]
    if num_factor_scores - num_out_classes > 0:
        unsup = h[:, num_out_classes:] @ params["w3"].T
        out_scores = jnp.concatenate([sup, unsup], axis=1)
    else:
        out_scores = sup
    if use_sigmoid_restriction:
        out_scores = jax.nn.sigmoid(sigmoid_eccentricity_coeff * out_scores)
    logits = sup
    if use_final_activation and use_sigmoid_restriction:
        logits = jax.nn.sigmoid(logits)
    return out_scores, logits


if __name__ == "__main__":
    num_series = 4
    num_in_timesteps = 16
    num_factor_scores = 8
    num_out_classes = 3
    hidden = 32                       # hidden_sizes = [32]
    tkw = num_in_timesteps - (num_in_timesteps - 1) % 2  # 15

    key = jax.random.PRNGKey(0)
    kx, k1, k2, k3, kx2 = jax.random.split(key, 5)

    fan1 = 1 * num_series * tkw
    w1 = jax.random.normal(k1, (hidden, 1, num_series, tkw), jnp.float32) / jnp.sqrt(fan1)
    fan2 = hidden * 1 * num_in_timesteps
    w2 = jax.random.normal(k2, (hidden, hidden, 1, num_in_timesteps), jnp.float32) / jnp.sqrt(fan2)
    w3 = jax.random.normal(
        k3, (num_factor_scores - num_out_classes, hidden - num_out_classes),
        jnp.float32) / jnp.sqrt(hidden - num_out_classes)
    params = {"w1": w1, "w2": w2, "w3": w3}

    cfg = dict(
        num_series=num_series,
        num_in_timesteps=num_in_timesteps,
        num_factor_scores=num_factor_scores,
        num_out_classes=num_out_classes,
        hidden=hidden,
        use_sigmoid_restriction=True,
        sigmoid_eccentricity_coeff=10.0,
        use_final_activation=True,
    )
    fwd = make_mlp_classifier(params, **cfg)   # weights packed once, jitted

    # --- small batch: single 128-wide tile ------------------------------------
    batch = 2
    X = jax.random.normal(kx, (batch, num_in_timesteps, num_series), jnp.float32)
    scores, logits = fwd(X)
    jax.block_until_ready((scores, logits))
    assert scores.shape == (batch, num_factor_scores)
    assert logits.shape == (batch, num_out_classes)
    ref_scores, ref_logits = reference_forward(X, params, **cfg)
    np.testing.assert_allclose(np.asarray(scores), np.asarray(ref_scores),
                               atol=1e-3, rtol=1e-3)
    np.testing.assert_allclose(np.asarray(logits), np.asarray(ref_logits),
                               atol=1e-3, rtol=1e-3)

    # --- larger batch: 2 grid steps (exercises multi-tile + batch padding) ----
    batch2 = 600
    X2 = jax.random.normal(kx2, (batch2, num_in_timesteps, num_series), jnp.float32)
    scores2, logits2 = fwd(X2)
    jax.block_until_ready((scores2, logits2))
    ref_scores2, ref_logits2 = reference_forward(X2, params, **cfg)
    np.testing.assert_allclose(np.asarray(scores2), np.asarray(ref_scores2),
                               atol=1e-3, rtol=1e-3)
    np.testing.assert_allclose(np.asarray(logits2), np.asarray(ref_logits2),
                               atol=1e-3, rtol=1e-3)

    # --- no-sigmoid / no-unsupervised-head config (F == K, w3 absent) ---------
    cfg2 = dict(
        num_series=num_series,
        num_in_timesteps=num_in_timesteps,
        num_factor_scores=num_out_classes,
        num_out_classes=num_out_classes,
        hidden=hidden,
        use_sigmoid_restriction=False,
        sigmoid_eccentricity_coeff=10.0,
        use_final_activation=True,
    )
    params2 = {"w1": w1, "w2": w2}
    fwd2 = make_mlp_classifier(params2, **cfg2)
    scores3, logits3 = fwd2(X)
    jax.block_until_ready((scores3, logits3))
    ref_scores3, ref_logits3 = reference_forward(X, params2, **cfg2)
    np.testing.assert_allclose(np.asarray(scores3), np.asarray(ref_scores3),
                               atol=1e-3, rtol=1e-3)
    np.testing.assert_allclose(np.asarray(logits3), np.asarray(ref_logits3),
                               atol=1e-3, rtol=1e-3)

    print("KERNEL_OK")
</pallas_src>

<mosaic_0001>
module attributes {stable_mosaic.version = 11 : i64} {
  func.func @_mlp_multiobj_kernel(%arg0: i32, %arg1: memref<128x64xf32, #tpu.memory_space<vmem>>, %arg2: memref<512x64xf32, #tpu.memory_space<vmem>>, %arg3: memref<32x512xf32, #tpu.memory_space<vmem>>, %arg4: memref<8x32xf32, #tpu.memory_space<vmem>>, %arg5: memref<8x128xf32, #tpu.memory_space<vmem>>, %arg6: memref<8x128xf32, #tpu.memory_space<vmem>>) attributes {dimension_semantics = [#tpu.dimension_semantics<parallel>], iteration_bounds = array<i64: 1>, scalar_prefetch = 0 : i64, scratch_operands = 0 : i64, tpu.core_type = #tpu.core_type<tc>, window_params = [{transform_indices = @transform_0, window_bounds = array<i64: 128, 64>}, {pipeline_mode = #tpu.pipeline_mode<synchronous>, transform_indices = @transform_1, window_bounds = array<i64: 512, 64>}, {pipeline_mode = #tpu.pipeline_mode<synchronous>, transform_indices = @transform_2, window_bounds = array<i64: 32, 512>}, {pipeline_mode = #tpu.pipeline_mode<synchronous>, transform_indices = @transform_3, window_bounds = array<i64: 8, 32>}, {transform_indices = @transform_4, window_bounds = array<i64: 8, 128>}, {transform_indices = @transform_5, window_bounds = array<i64: 8, 128>}]} {
    %c0 = arith.constant 0 : index
    %c0_0 = arith.constant 0 : index
    %0 = vector.load %arg1[%c0, %c0_0] : memref<128x64xf32, #tpu.memory_space<vmem>>, vector<128x64xf32>
    %c0_1 = arith.constant 0 : index
    %c0_2 = arith.constant 0 : index
    %1 = vector.load %arg2[%c0_1, %c0_2] : memref<512x64xf32, #tpu.memory_space<vmem>>, vector<512x64xf32>
    %cst = arith.constant dense<0.000000e+00> : vector<512x128xf32>
    %2 = tpu.matmul %1, %0, %cst {dimension_numbers = #tpu.dot_dimension_numbers<[1], [1], [0], [0], [0, 0, 1, 0], [], []>} : vector<512x64xf32>, vector<128x64xf32>, vector<512x128xf32> -> vector<512x128xf32>
    %cst_3 = arith.constant 0.000000e+00 : f32
    %3 = vector.broadcast %cst_3 : f32 to vector<512x128xf32>
    %4 = arith.maximumf %2, %3 : vector<512x128xf32>
    %c0_4 = arith.constant 0 : index
    %c0_5 = arith.constant 0 : index
    %5 = vector.load %arg3[%c0_4, %c0_5] : memref<32x512xf32, #tpu.memory_space<vmem>>, vector<32x512xf32>
    %cst_6 = arith.constant dense<0.000000e+00> : vector<32x128xf32>
    %6 = tpu.matmul %5, %4, %cst_6 {dimension_numbers = #tpu.dot_dimension_numbers<[1], [0], [0], [1], [0, 0, 1, 1], [], []>} : vector<32x512xf32>, vector<512x128xf32>, vector<32x128xf32> -> vector<32x128xf32>
    %cst_7 = arith.constant 0.000000e+00 : f32
    %7 = vector.broadcast %cst_7 : f32 to vector<32x128xf32>
    %8 = arith.maximumf %6, %7 : vector<32x128xf32>
    %c0_8 = arith.constant 0 : index
    %c0_9 = arith.constant 0 : index
    %9 = vector.load %arg4[%c0_8, %c0_9] : memref<8x32xf32, #tpu.memory_space<vmem>>, vector<8x32xf32>
    %cst_10 = arith.constant dense<0.000000e+00> : vector<8x128xf32>
    %10 = tpu.matmul %9, %8, %cst_10 {dimension_numbers = #tpu.dot_dimension_numbers<[1], [0], [0], [1], [0, 0, 1, 1], [], []>} : vector<8x32xf32>, vector<32x128xf32>, vector<8x128xf32> -> vector<8x128xf32>
    %11 = arith.negf %10 : vector<8x128xf32>
    %12 = math.exp %11 : vector<8x128xf32>
    %cst_11 = arith.constant 1.000000e+00 : f32
    %13 = vector.broadcast %cst_11 : f32 to vector<8x128xf32>
    %14 = arith.addf %13, %12 : vector<8x128xf32>
    %15 = arith.divf %13, %14 : vector<8x128xf32>
    %c0_12 = arith.constant 0 : index
    %c0_13 = arith.constant 0 : index
    %16 = vector.load %arg5[%c0_12, %c0_13] : memref<8x128xf32, #tpu.memory_space<vmem>>, vector<8x128xf32>
    tpu.vector_store %arg5[%c0_12, %c0_13], %15 {strides = array<i32>} : memref<8x128xf32, #tpu.memory_space<vmem>>, vector<8x128xf32>,
    %17 = vector.extract_strided_slice %8 {offsets = [0, 0], sizes = [8, 128], strides = [1, 1]} : vector<32x128xf32> to vector<8x128xf32>
    %18 = arith.negf %17 : vector<8x128xf32>
    %19 = math.exp %18 : vector<8x128xf32>
    %cst_14 = arith.constant 1.000000e+00 : f32
    %20 = vector.broadcast %cst_14 : f32 to vector<8x128xf32>
    %21 = arith.addf %20, %19 : vector<8x128xf32>
    %22 = arith.divf %20, %21 : vector<8x128xf32>
    %c0_15 = arith.constant 0 : index
    %c0_16 = arith.constant 0 : index
    %23 = vector.load %arg6[%c0_15, %c0_16] : memref<8x128xf32, #tpu.memory_space<vmem>>, vector<8x128xf32>
    tpu.vector_store %arg6[%c0_15, %c0_16], %22 {strides = array<i32>} : memref<8x128xf32, #tpu.memory_space<vmem>>, vector<8x128xf32>,
    return
  }
  func.func @transform_0(%arg0: i32) -> (i32, i32) {
    %c0_i32 = arith.constant 0 : i32
    %c0_i32_0 = arith.constant 0 : i32
    return %arg0, %c0_i32 : i32, i32
  }
  func.func @transform_1(%arg0: i32) -> (i32, i32) {
    %c0_i32 = arith.constant 0 : i32
    %c0_i32_0 = arith.constant 0 : i32
    %c0_i32_1 = arith.constant 0 : i32
    return %c0_i32, %c0_i32_0 : i32, i32
  }
  func.func @transform_2(%arg0: i32) -> (i32, i32) {
    %c0_i32 = arith.constant 0 : i32
    %c0_i32_0 = arith.constant 0 : i32
    %c0_i32_1 = arith.constant 0 : i32
    return %c0_i32, %c0_i32_0 : i32, i32
  }
  func.func @transform_3(%arg0: i32) -> (i32, i32) {
    %c0_i32 = arith.constant 0 : i32
    %c0_i32_0 = arith.constant 0 : i32
    %c0_i32_1 = arith.constant 0 : i32
    return %c0_i32, %c0_i32_0 : i32, i32
  }
  func.func @transform_4(%arg0: i32) -> (i32, i32) {
    %c0_i32 = arith.constant 0 : i32
    %c0_i32_0 = arith.constant 0 : i32
    return %c0_i32, %arg0 : i32, i32
  }
  func.func @transform_5(%arg0: i32) -> (i32, i32) {
    %c0_i32 = arith.constant 0 : i32
    %c0_i32_0 = arith.constant 0 : i32
    return %c0_i32, %arg0 : i32, i32
  }
}

</mosaic_0001>

<bundles_post_ra>
// kernel: mlp_classifier_forward.1
= control target key start
LH: loop header
LB: loop body
LE: loop exit
PB: predicated region body
PF: predicated region fallthrough
CT: control target
= control target key end

     0   :  { %11 = vsyncpa [#allocation3], 0  ;;  %s1658_s18 = smov [#allocation2]   ;;  %s1996_s0 = inlined_call_operand.vmem [shape: f32[128,64], index: 0, kind: input, shape index: {}]   ;;  %s1997_s1 = inlined_call_operand.hbm [shape: f32[512,64], index: 1, kind: input, shape index: {}]   ;;  %s1998_s2 = inlined_call_operand.vmem [shape: f32[32,512], index: 2, kind: input, shape index: {}]   ;;  %s1999_s3 = inlined_call_operand.vmem [shape: f32[8,32], index: 3, kind: input, shape index: {}]   ;;  %s2000_s4 = inlined_call_operand.vmem [shape: f32[8,128], index: 4, kind: output, shape index: {0}]   ;;  %s2001_s5 = inlined_call_operand.vmem [shape: f32[8,128], index: 5, kind: output, shape index: {1}]  }
   0x1   :  { %s19_s19 = sshll.u32 %s1658_s18, 4  ;;  %s1634_s22 = scalar_lea.hbm %s1997_s1, 8192  ;;  %s20_s19 = int_to_ptr.vmem [resolvable:$true] %s19_s19 }
   0x2   :  { %p1635_p0 = scmp.ne.s32.totalorder %s1997_s1, %s1634_s22  ;;  %p1638_p1 = scmp.lt.u32.totalorder %s1634_s22, %s1997_s1 }
   0x4   :  { %p1640_p2 = pnand %p1638_p1, %p1635_p0 }
   0x6   :  { %1643 = shalt.err (!%p1640_p2)
}
   0x7   :  { %s1644_s27 = scalar_lea.vmem %s20_s19, 8192  ;;  %p1649_p4 = scmp.lt.s32.totalorder %s20_s19, %s20_s19 }
   0x8   :  { %p1645_p3 = scmp.ne.s32.totalorder %s20_s19, %s1644_s27  ;;  %p1650_p5 = scmp.lt.s32.totalorder %s1644_s27, %s1644_s27 }
   0xa   :  { %p1651_p6 = por %p1650_p5, %p1649_p4 }
   0xc   :  { %p1652_p7 = pnand %p1651_p6, %p1645_p3 }
   0xe   :  { %1655 = shalt.err (!%p1652_p7)
}
   0xf   :  { %s1659_s28 = smov 128   ;;  %s1660_s29 = smov 8  }
  0x10   :  { %25 = dma.hbm_to_vmem [thread:$0]  %s1997_s1, 8192, %s20_s19, [#allocation3], %s1659_s28, %s1659_s28, %s1660_s29  }
  0x11   :  { %1656 = dma.done.wait [#allocation3], 8192  }
  0x12   :  { %1657 = vsyncadd [#allocation3], 4294959104  ;;  %vm113_vm0 = vcmask 523264   ;;  %v33_v1 = vld [vmem:[%s1996_s0] sm:$0xff]  ;;  %v34_v2 = vld [vmem:[%s1996_s0 + $0x8] sm:$0xff]  ;;  %vm1662_vm2 = vmmov 0  }
  0x13   :  { %vm1708_vm1 = vmpackc.low %vm113_vm0, %vm113_vm0  ;;  %v35_v3 = vld [vmem:[%s1996_s0 + $0x10] sm:$0xff]  ;;  %v1486_v4 = vpack.c.bf16 %v34_v2, %v33_v1  ;;  %v36_v5 = vld [vmem:[%s1996_s0 + $0x18] sm:$0xff]  ;;  %vm994_vm3 = vcmask 261120  }
  0x14   :  { %v1492_v6 = vpack.c.bf16 %v36_v5, %v35_v3  ;;  %v49_v7 = vld [vmem:[#allocation2] sm:$0xff]  ;;  %v38_v9 = vld [vmem:[%s1996_s0 + $0x28] sm:$0xff]  ;;  %v39_v11 = vld [vmem:[%s1996_s0 + $0x30] sm:$0xff] }
  0x15   :  { %1488 = vmatprep.subr.msk.bf16.mxu0 %vm1708_vm1, %v1486_v4  ;;  %1604 = vmatprep.subr.msk.bf16.mxu1 %vm1708_vm1, %v1486_v4  ;;  %v37_v8 = vld [vmem:[%s1996_s0 + $0x20] sm:$0xff]  ;;  %v40_v12 = vld [vmem:[%s1996_s0 + $0x38] sm:$0xff]  ;;  %v95_v13 = vld [vmem:[#allocation2 + $0x170] sm:$0xff] }
  0x16   :  { %1491 = vmatpush3.bf16.xpose.msk.msra.mxu0 %vm1708_vm1, %v1486_v4  ;;  %1612 = vmatpush3.bf16.xpose.msk.msra.mxu1 %vm1708_vm1, %v1486_v4  ;;  %v1498_v10 = vpack.c.bf16 %v38_v9, %v37_v8  ;;  %v1504_v14 = vpack.c.bf16 %v40_v12, %v39_v11  ;;  %v41_v15 = vld [vmem:[%s1996_s0 + $0x40] sm:$0xff]  ;;  %v42_v16 = vld [vmem:[%s1996_s0 + $0x48] sm:$0xff]  ;;  %v43_v18 = vld [vmem:[%s1996_s0 + $0x50] sm:$0xff] }
  0x17   :  { %1494 = vmatprep.subr.msk.bf16.mxu0 %vm1708_vm1, %v1492_v6  ;;  %1605 = vmatprep.subr.msk.bf16.mxu1 %vm1708_vm1, %v1492_v6  ;;  %v1510_v17 = vpack.c.bf16 %v42_v16, %v41_v15  ;;  %v44_v19 = vld [vmem:[%s1996_s0 + $0x58] sm:$0xff]  ;;  %v45_v21 = vld [vmem:[%s1996_s0 + $0x60] sm:$0xff]  ;;  %v46_v22 = vld [vmem:[%s1996_s0 + $0x68] sm:$0xff] }
  0x18   :  { %1379 = vmatprep.mubr.msk.f32.mxu0 %vm113_vm0, %v49_v7  ;;  %1448 = vmatprep.mubr.msk.f32.mxu1 %vm113_vm0, %v95_v13  ;;  %v1516_v20 = vpack.c.bf16 %v44_v19, %v43_v18  ;;  %v1522_v23 = vpack.c.bf16 %v46_v22, %v45_v21  ;;  %v47_v24 = vld [vmem:[%s1996_s0 + $0x70] sm:$0xff]  ;;  %v48_v25 = vld [vmem:[%s1996_s0 + $0x78] sm:$0xff]  ;;  %v50_v27 = vld [vmem:[#allocation2 + $0x8] sm:$0xff] }
  0x19   :  { %v1528_v26 = vpack.c.bf16 %v48_v25, %v47_v24  ;;  %v96_v28 = vld [vmem:[#allocation2 + $0x178] sm:$0xff]  ;;  %v51_v29 = vld [vmem:[#allocation2 + $0x10] sm:$0xff]  ;;  %v97_v30 = vld [vmem:[#allocation2 + $0x180] sm:$0xff] }
  0x1a   :  { %v52_v31 = vld [vmem:[#allocation2 + $0x18] sm:$0xff]  ;;  %v98_v32 = vld [vmem:[#allocation2 + $0x188] sm:$0xff]  ;;  %v53_v33 = vld [vmem:[#allocation2 + $0x20] sm:$0xff] }
  0x1b   :  { %v99_v34 = vld [vmem:[#allocation2 + $0x190] sm:$0xff]  ;;  %v54_v35 = vld [vmem:[#allocation2 + $0x28] sm:$0xff]  ;;  %v100_v36 = vld [vmem:[#allocation2 + $0x198] sm:$0xff] }
  0x1c   :  { %v55_v37 = vld [vmem:[#allocation2 + $0x30] sm:$0xff]  ;;  %v101_v38 = vld [vmem:[#allocation2 + $0x1a0] sm:$0xff]  ;;  %v56_v39 = vld [vmem:[#allocation2 + $0x38] sm:$0xff] }
  0x1d   :  { %v102_v40 = vld [vmem:[#allocation2 + $0x1a8] sm:$0xff]  ;;  %v57_v41 = vld [vmem:[#allocation2 + $0x40] sm:$0xff]  ;;  %v103_v42 = vld [vmem:[#allocation2 + $0x1b0] sm:$0xff] }
  0x1e   :  { %1497 = vmatpush3.bf16.xpose.msk.msra.mxu0 %vm1708_vm1, %v1492_v6  ;;  %1613 = vmatpush3.bf16.xpose.msk.msra.mxu1 %vm1708_vm1, %v1492_v6  ;;  %v58_v43 = vld [vmem:[#allocation2 + $0x48] sm:$0xff]  ;;  %v104_v44 = vld [vmem:[#allocation2 + $0x1b8] sm:$0xff]  ;;  %v59_v45 = vld [vmem:[#allocation2 + $0x50] sm:$0xff] }
  0x1f   :  { %1500 = vmatprep.subr.msk.bf16.mxu0 %vm1708_vm1, %v1498_v10  ;;  %1606 = vmatprep.subr.msk.bf16.mxu1 %vm1708_vm1, %v1498_v10  ;;  %v105_v46 = vld [vmem:[#allocation2 + $0x1c0] sm:$0xff]  ;;  %v60_v47 = vld [vmem:[#allocation2 + $0x58] sm:$0xff]  ;;  %v106_v48 = vld [vmem:[#allocation2 + $0x1c8] sm:$0xff] }
  0x20   :  { %v61_v49 = vld [vmem:[#allocation2 + $0x60] sm:$0xff]  ;;  %v107_v50 = vld [vmem:[#allocation2 + $0x1d0] sm:$0xff]  ;;  %v62_v51 = vld [vmem:[#allocation2 + $0x68] sm:$0xff] }
  0x21   :  { %v108_v52 = vld [vmem:[#allocation2 + $0x1d8] sm:$0xff]  ;;  %v63_v53 = vld [vmem:[#allocation2 + $0x70] sm:$0xff]  ;;  %v109_v54 = vld [vmem:[#allocation2 + $0x1e0] sm:$0xff] }
  0x22   :  { %v64_v55 = vld [vmem:[#allocation2 + $0x78] sm:$0xff]  ;;  %v110_v56 = vld [vmem:[#allocation2 + $0x1e8] sm:$0xff]  ;;  %v65_v57 = vld [vmem:[#allocation2 + $0x80] sm:$0xff] }
  0x23   :  { %v111_v58 = vld [vmem:[#allocation2 + $0x1f0] sm:$0xff]  ;;  %v66_v59 = vld [vmem:[#allocation2 + $0x88] sm:$0xff]  ;;  %v112_v60 = vld [vmem:[#allocation2 + $0x1f8] sm:$0xff] }
  0x24   :  { %v67_v61 = vld [vmem:[#allocation2 + $0x90] sm:$0xff]  ;;  %v68_v62 = vld [vmem:[#allocation2 + $0x98] sm:$0xff]  ;;  %v69_v63 = vld [vmem:[#allocation2 + $0xa0] sm:$0xff] }
  0x25   :  { %v70_v0 = vld [vmem:[#allocation2 + $0xa8] sm:$0xff]  ;;  %v71_v1 = vld [vmem:[#allocation2 + $0xb0] sm:$0xff]  ;;  %v72_v2 = vld [vmem:[#allocation2 + $0xb8] sm:$0xff] }
  0x26   :  { %1503 = vmatpush3.bf16.xpose.msk.msra.mxu0 %vm1708_vm1, %v1498_v10  ;;  %1614 = vmatpush3.bf16.xpose.msk.msra.mxu1 %vm1708_vm1, %v1498_v10  ;;  %v73_v3 = vld [vmem:[#allocation2 + $0xc0] sm:$0xff]  ;;  %v74_v4 = vld [vmem:[#allocation2 + $0xc8] sm:$0xff]  ;;  %v75_v5 = vld [vmem:[#allocation2 + $0xd0] sm:$0xff] }
  0x27   :  { %1506 = vmatprep.subr.msk.bf16.mxu0 %vm1708_vm1, %v1504_v14  ;;  %1607 = vmatprep.subr.msk.bf16.mxu1 %vm1708_vm1, %v1504_v14  ;;  %v76_v6 = vld [vmem:[#allocation2 + $0xd8] sm:$0xff]  ;;  %v77_v7 = vld [vmem:[#allocation2 + $0xe0] sm:$0xff]  ;;  %v78_v8 = vld [vmem:[#allocation2 + $0xe8] sm:$0xff] }
  0x28   :  { %v79_v9 = vld [vmem:[#allocation2 + $0xf0] sm:$0xff]  ;;  %v80_v10 = vld [vmem:[#allocation2 + $0xf8] sm:$0xff]  ;;  %v81_v11 = vld [vmem:[#allocation2 + $0x100] sm:$0xff] }
  0x29   :  { %v82_v12 = vld [vmem:[#allocation2 + $0x108] sm:$0xff]  ;;  %v83_v13 = vld [vmem:[#allocation2 + $0x110] sm:$0xff]  ;;  %v85_v15 = vld [vmem:[#allocation2 + $0x120] sm:$0xff] }
  0x2a   :  { %v86_v16 = vld [vmem:[#allocation2 + $0x128] sm:$0xff]  ;;  %v88_v18 = vld [vmem:[#allocation2 + $0x138] sm:$0xff]  ;;  %v89_v19 = vld [vmem:[#allocation2 + $0x140] sm:$0xff] }
  0x2b   :  { %v91_v21 = vld [vmem:[#allocation2 + $0x150] sm:$0xff]  ;;  %v92_v22 = vld [vmem:[#allocation2 + $0x158] sm:$0xff]  ;;  %v94_v24 = vld [vmem:[#allocation2 + $0x168] sm:$0xff] }
  0x2c   :  { %v804_v25 = vld [vmem:[%s1998_s2 + $0x8] sm:$0xff] }
  0x2e   :  { %1509 = vmatpush3.bf16.xpose.msk.msra.mxu0 %vm1708_vm1, %v1504_v14  ;;  %1615 = vmatpush3.bf16.xpose.msk.msra.mxu1 %vm1708_vm1, %v1504_v14  ;;  %v84_v14 = vld [vmem:[#allocation2 + $0x118] sm:$0xff] }
  0x2f   :  { %1512 = vmatprep.subr.msk.bf16.mxu0 %vm1708_vm1, %v1510_v17  ;;  %1608 = vmatprep.subr.msk.bf16.mxu1 %vm1708_vm1, %v1510_v17 }
  0x36   :  { %1515 = vmatpush3.bf16.xpose.msk.msra.mxu0 %vm1708_vm1, %v1510_v17  ;;  %1616 = vmatpush3.bf16.xpose.msk.msra.mxu1 %vm1708_vm1, %v1510_v17  ;;  %v87_v17 = vld [vmem:[#allocation2 + $0x130] sm:$0xff] }
  0x37   :  { %1518 = vmatprep.subr.msk.bf16.mxu0 %vm1708_vm1, %v1516_v20  ;;  %1609 = vmatprep.subr.msk.bf16.mxu1 %vm1708_vm1, %v1516_v20 }
  0x3e   :  { %1521 = vmatpush3.bf16.xpose.msk.msra.mxu0 %vm1708_vm1, %v1516_v20  ;;  %1617 = vmatpush3.bf16.xpose.msk.msra.mxu1 %vm1708_vm1, %v1516_v20  ;;  %v90_v20 = vld [vmem:[#allocation2 + $0x148] sm:$0xff] }
  0x3f   :  { %1524 = vmatprep.subr.msk.bf16.mxu0 %vm1708_vm1, %v1522_v23  ;;  %1610 = vmatprep.subr.msk.bf16.mxu1 %vm1708_vm1, %v1522_v23 }
  0x46   :  { %1527 = vmatpush3.bf16.xpose.msk.msra.mxu0 %vm1708_vm1, %v1522_v23  ;;  %1618 = vmatpush3.bf16.xpose.msk.msra.mxu1 %vm1708_vm1, %v1522_v23  ;;  %v93_v23 = vld [vmem:[#allocation2 + $0x160] sm:$0xff] }
  0x47   :  { %1530 = vmatprep.subr.msk.bf16.mxu0 %vm1708_vm1, %v1528_v26  ;;  %1611 = vmatprep.subr.msk.bf16.mxu1 %vm1708_vm1, %v1528_v26 }
  0x4e   :  { %1533 = vmatpush3.bf16.xpose.msk.msra.mxu0 %vm1708_vm1, %v1528_v26  ;;  %1619 = vmatpush3.bf16.xpose.msk.msra.mxu1 %vm1708_vm1, %v1528_v26 }
  0x55   :  { %1380 = vmatmul.mubr.msk.f32.vlgmr.msra.gmra.mrb[0].mxu0 %vm113_vm0, %v50_v27  ;;  %1449 = vmatmul.mubr.msk.f32.vlgmr.msra.gmra.mrb[0].mxu1 %vm113_vm0, %v96_v28 }
  0x56   :  { %1382 = vmatprep.mubr.msk.f32.mxu0 %vm113_vm0, %v51_v29  ;;  %1451 = vmatprep.mubr.msk.f32.mxu1 %vm113_vm0, %v97_v30 }
  0x59   :  { %1383 = vmatmul.mubr.msk.f32.gmra.mrb[2].mxu0 %vm113_vm0, %v52_v31  ;;  %1452 = vmatmul.mubr.msk.f32.gmra.mrb[2].mxu1 %vm113_vm0, %v98_v32 }
  0x5a   :  { %1385 = vmatprep.mubr.msk.f32.mxu0 %vm113_vm0, %v53_v33  ;;  %1454 = vmatprep.mubr.msk.f32.mxu1 %vm113_vm0, %v99_v34 }
  0x5d   :  { %1386 = vmatmul.mubr.msk.f32.gmra.mrb[4].mxu0 %vm113_vm0, %v54_v35  ;;  %1455 = vmatmul.mubr.msk.f32.gmra.mrb[4].mxu1 %vm113_vm0, %v100_v36 }
  0x5e   :  { %1388 = vmatprep.mubr.msk.f32.mxu0 %vm113_vm0, %v55_v37  ;;  %1457 = vmatprep.mubr.msk.f32.mxu1 %vm113_vm0, %v101_v38 }
  0x61   :  { %1389 = vmatmul.mubr.msk.f32.gmra.mrb[6].mxu0 %vm113_vm0, %v56_v39  ;;  %1458 = vmatmul.mubr.msk.f32.gmra.mrb[6].mxu1 %vm113_vm0, %v102_v40 }
  0x62   :  { %1391 = vmatprep.mubr.msk.f32.mxu0 %vm113_vm0, %v57_v41  ;;  %1460 = vmatprep.mubr.msk.f32.mxu1 %vm113_vm0, %v103_v42 }
  0x65   :  { %1392 = vmatmul.mubr.msk.f32.gmra.mrb[8].mxu0 %vm113_vm0, %v58_v43  ;;  %1461 = vmatmul.mubr.msk.f32.gmra.mrb[8].mxu1 %vm113_vm0, %v104_v44 }
  0x66   :  { %1394 = vmatprep.mubr.msk.f32.mxu0 %vm113_vm0, %v59_v45  ;;  %1463 = vmatprep.mubr.msk.f32.mxu1 %vm113_vm0, %v105_v46 }
  0x69   :  { %1395 = vmatmul.mubr.msk.f32.gmra.mrb[10].mxu0 %vm113_vm0, %v60_v47  ;;  %1464 = vmatmul.mubr.msk.f32.gmra.mrb[10].mxu1 %vm113_vm0, %v106_v48 }
  0x6a   :  { %1397 = vmatprep.mubr.msk.f32.mxu0 %vm113_vm0, %v61_v49  ;;  %1466 = vmatprep.mubr.msk.f32.mxu1 %vm113_vm0, %v107_v50 }
  0x6d   :  { %1398 = vmatmul.mubr.msk.f32.gmra.mrb[12].mxu0 %vm113_vm0, %v62_v51  ;;  %1467 = vmatmul.mubr.msk.f32.gmra.mrb[12].mxu1 %vm113_vm0, %v108_v52 }
  0x6e   :  { %1400 = vmatprep.mubr.msk.f32.mxu0 %vm113_vm0, %v63_v53  ;;  %1469 = vmatprep.mubr.msk.f32.mxu1 %vm113_vm0, %v109_v54 }
  0x71   :  { %1401 = vmatmul.mubr.msk.f32.gmra.mrb[14].mxu0 %vm113_vm0, %v64_v55  ;;  %1470 = vmatmul.mubr.msk.f32.gmra.mrb[14].mxu1 %vm113_vm0, %v110_v56 }
  0x72   :  { %1403 = vmatprep.mubr.msk.f32.mxu0 %vm113_vm0, %v65_v57  ;;  %1472 = vmatprep.mubr.msk.f32.mxu1 %vm113_vm0, %v111_v58 }
  0x75   :  { %1404 = vmatmul.mubr.msk.f32.gmra.mrb[16].mxu0 %vm113_vm0, %v66_v59  ;;  %1473 = vmatmul.mubr.msk.f32.gmra.mrb[16].mxu1 %vm113_vm0, %v112_v60 }
  0x76   :  { %1406 = vmatprep.mubr.msk.f32.mxu0 %vm113_vm0, %v67_v61  ;;  %883 = vmatprep.mubr.f32.mxu1 %v804_v25 }
  0x79   :  { %1407 = vmatmul.mubr.msk.f32.gmra.mrb[18].mxu0 %vm113_vm0, %v68_v62 }
  0x7a   :  { %1409 = vmatprep.mubr.msk.f32.mxu0 %vm113_vm0, %v69_v63 }
  0x7d   :  { %1410 = vmatmul.mubr.msk.f32.gmra.mrb[20].mxu0 %vm113_vm0, %v70_v0 }
  0x7e   :  { %1412 = vmatprep.mubr.msk.f32.mxu0 %vm113_vm0, %v71_v1 }
  0x81   :  { %1413 = vmatmul.mubr.msk.f32.gmra.mrb[22].mxu0 %vm113_vm0, %v72_v2 }
  0x82   :  { %1415 = vmatprep.mubr.msk.f32.mxu0 %vm113_vm0, %v73_v3 }
  0x85   :  { %1416 = vmatmul.mubr.msk.f32.gmra.mrb[24].mxu0 %vm113_vm0, %v74_v4 }
  0x86   :  { %1418 = vmatprep.mubr.msk.f32.mxu0 %vm113_vm0, %v75_v5 }
  0x89   :  { %1419 = vmatmul.mubr.msk.f32.gmra.mrb[26].mxu0 %vm113_vm0, %v76_v6 }
  0x8a   :  { %1421 = vmatprep.mubr.msk.f32.mxu0 %vm113_vm0, %v77_v7 }
  0x8d   :  { %1422 = vmatmul.mubr.msk.f32.gmra.mrb[28].mxu0 %vm113_vm0, %v78_v8 }
  0x8e   :  { %1424 = vmatprep.mubr.msk.f32.mxu0 %vm113_vm0, %v79_v9 }
  0x91   :  { %1425 = vmatmul.mubr.msk.f32.gmra.mrb[30].mxu0 %vm113_vm0, %v80_v10 }
  0x92   :  { %1427 = vmatprep.mubr.msk.f32.mxu0 %vm113_vm0, %v81_v11 }
  0x95   :  { %1428 = vmatmul.mubr.msk.f32.gmra.mrb[32].mxu0 %vm113_vm0, %v82_v12 }
  0x96   :  { %1430 = vmatprep.mubr.msk.f32.mxu0 %vm113_vm0, %v83_v13 }
  0x99   :  { %1431 = vmatmul.mubr.msk.f32.gmra.mrb[34].mxu0 %vm113_vm0, %v84_v14 }
  0x9a   :  { %1433 = vmatprep.mubr.msk.f32.mxu0 %vm113_vm0, %v85_v15 }
  0x9d   :  { %1434 = vmatmul.mubr.msk.f32.gmra.mrb[36].mxu0 %vm113_vm0, %v86_v16 }
  0x9e   :  { %1436 = vmatprep.mubr.msk.f32.mxu0 %vm113_vm0, %v87_v17 }
  0xa1   :  { %1437 = vmatmul.mubr.msk.f32.gmra.mrb[38].mxu0 %vm113_vm0, %v88_v18 }
  0xa2   :  { %1439 = vmatprep.mubr.msk.f32.mxu0 %vm113_vm0, %v89_v19 }
  0xa5   :  { %1440 = vmatmul.mubr.msk.f32.gmra.mrb[40].mxu0 %vm113_vm0, %v90_v20 }
  0xa6   :  { %1442 = vmatprep.mubr.msk.f32.mxu0 %vm113_vm0, %v91_v21 }
  0xa9   :  { %1443 = vmatmul.mubr.msk.f32.gmra.mrb[42].mxu0 %vm113_vm0, %v92_v22 }
  0xaa   :  { %1445 = vmatprep.mubr.msk.f32.mxu0 %vm113_vm0, %v93_v23 }
  0xad   :  { %1446 = vmatmul.mubr.msk.f32.gmra.mrb[44].mxu0 %vm113_vm0, %v94_v24 }
 0x128   :  { %v1381_v26 = vpop.f32.mrb[0].mxu0  ;;  %v1450_v27 = vpop.f32.mrb[0].mxu1 }
 0x129   :  { %v740_v28 = vmax.f32 %v1381_v26, 0.0  ;;  %v420_v29 = vpop.f32.mrb[1].mxu0  ;;  %v786_v30 = vmax.f32 %v1450_v27, 0.0  ;;  %v650_v31 = vpop.f32.mrb[1].mxu1 }
 0x12a   :  { %v739_v32 = vmax.f32 %v420_v29, 0.0  ;;  %v785_v33 = vmax.f32 %v650_v31, 0.0 }
 0x12c   :  { %v1891_v34 = vpack.c.bf16 %v740_v28, %v739_v32  ;;  %v1384_v35 = vpop.f32.mrb[2].mxu0  ;;  %v1893_v36 = vpack.c.bf16 %v786_v30, %v785_v33  ;;  %v1453_v37 = vpop.f32.mrb[2].mxu1 }
 0x12d   :  { %v742_v38 = vmax.f32 %v1384_v35, 0.0  ;;  %v430_v39 = vpop.f32.mrb[3].mxu0  ;;  %v788_v40 = vmax.f32 %v1453_v37, 0.0  ;;  %v660_v41 = vpop.f32.mrb[3].mxu1 }
 0x12e   :  { %v741_v42 = vmax.f32 %v430_v39, 0.0  ;;  %v787_v43 = vmax.f32 %v660_v41, 0.0 }
 0x130   :  { %v1895_v44 = vpack.c.bf16 %v742_v38, %v741_v42  ;;  %v1387_v45 = vpop.f32.mrb[4].mxu0  ;;  %v1897_v46 = vpack.c.bf16 %v788_v40, %v787_v43  ;;  %v1456_v47 = vpop.f32.mrb[4].mxu1 }
 0x131   :  { %v744_v48 = vmax.f32 %v1387_v45, 0.0  ;;  %v440_v49 = vpop.f32.mrb[5].mxu0  ;;  %v790_v50 = vmax.f32 %v1456_v47, 0.0  ;;  %v670_v51 = vpop.f32.mrb[5].mxu1 }
 0x132   :  { %v743_v52 = vmax.f32 %v440_v49, 0.0  ;;  %v789_v53 = vmax.f32 %v670_v51, 0.0 }
 0x134   :  { %v1899_v54 = vpack.c.bf16 %v744_v48, %v743_v52  ;;  %v1390_v55 = vpop.f32.mrb[6].mxu0  ;;  %v1901_v56 = vpack.c.bf16 %v790_v50, %v789_v53  ;;  %v1459_v57 = vpop.f32.mrb[6].mxu1 }
 0x135   :  { %v746_v58 = vmax.f32 %v1390_v55, 0.0  ;;  %v450_v59 = vpop.f32.mrb[7].mxu0  ;;  %v792_v60 = vmax.f32 %v1459_v57, 0.0  ;;  %v680_v61 = vpop.f32.mrb[7].mxu1 }
 0x136   :  { %v745_v62 = vmax.f32 %v450_v59, 0.0  ;;  %v791_v63 = vmax.f32 %v680_v61, 0.0 }
 0x138   :  { %v1903_v0 = vpack.c.bf16 %v746_v58, %v745_v62  ;;  %v1393_v1 = vpop.f32.mrb[8].mxu0  ;;  %v1905_v2 = vpack.c.bf16 %v792_v60, %v791_v63  ;;  %v1462_v3 = vpop.f32.mrb[8].mxu1 }
 0x139   :  { %v748_v4 = vmax.f32 %v1393_v1, 0.0  ;;  %v460_v5 = vpop.f32.mrb[9].mxu0  ;;  %v794_v6 = vmax.f32 %v1462_v3, 0.0  ;;  %v690_v7 = vpop.f32.mrb[9].mxu1 }
 0x13a   :  { %v747_v8 = vmax.f32 %v460_v5, 0.0  ;;  %v793_v9 = vmax.f32 %v690_v7, 0.0 }
 0x13c   :  { %v1907_v10 = vpack.c.bf16 %v748_v4, %v747_v8  ;;  %v1396_v11 = vpop.f32.mrb[10].mxu0  ;;  %v1909_v12 = vpack.c.bf16 %v794_v6, %v793_v9  ;;  %v1465_v13 = vpop.f32.mrb[10].mxu1 }
 0x13d   :  { %v750_v14 = vmax.f32 %v1396_v11, 0.0  ;;  %v470_v15 = vpop.f32.mrb[11].mxu0  ;;  %v796_v16 = vmax.f32 %v1465_v13, 0.0  ;;  %v700_v17 = vpop.f32.mrb[11].mxu1 }
 0x13e   :  { %v749_v18 = vmax.f32 %v470_v15, 0.0  ;;  %v795_v19 = vmax.f32 %v700_v17, 0.0 }
 0x140   :  { %v1911_v20 = vpack.c.bf16 %v750_v14, %v749_v18  ;;  %v1399_v21 = vpop.f32.mrb[12].mxu0  ;;  %v1913_v22 = vpack.c.bf16 %v796_v16, %v795_v19  ;;  %v1468_v23 = vpop.f32.mrb[12].mxu1 }
 0x141   :  { %v752_v24 = vmax.f32 %v1399_v21, 0.0  ;;  %v480_v25 = vpop.f32.mrb[13].mxu0  ;;  %v798_v26 = vmax.f32 %v1468_v23, 0.0  ;;  %v710_v27 = vpop.f32.mrb[13].mxu1 }
 0x142   :  { %v751_v28 = vmax.f32 %v480_v25, 0.0  ;;  %v797_v29 = vmax.f32 %v710_v27, 0.0 }
 0x144   :  { %v1915_v30 = vpack.c.bf16 %v752_v24, %v751_v28  ;;  %v1402_v31 = vpop.f32.mrb[14].mxu0  ;;  %v1917_v32 = vpack.c.bf16 %v798_v26, %v797_v29  ;;  %v1471_v33 = vpop.f32.mrb[14].mxu1 }
 0x145   :  { %v754_v35 = vmax.f32 %v1402_v31, 0.0  ;;  %v490_v37 = vpop.f32.mrb[15].mxu0  ;;  %v800_v38 = vmax.f32 %v1471_v33, 0.0  ;;  %v720_v39 = vpop.f32.mrb[15].mxu1 }
 0x146   :  { %v753_v40 = vmax.f32 %v490_v37, 0.0  ;;  %v799_v41 = vmax.f32 %v720_v39, 0.0 }
 0x148   :  { %v1919_v42 = vpack.c.bf16 %v754_v35, %v753_v40  ;;  %v1405_v43 = vpop.f32.mrb[16].mxu0  ;;  %v1921_v45 = vpack.c.bf16 %v800_v38, %v799_v41  ;;  %v1474_v47 = vpop.f32.mrb[16].mxu1 }
 0x149   :  { %v756_v48 = vmax.f32 %v1405_v43, 0.0  ;;  %v500_v49 = vpop.f32.mrb[17].mxu0  ;;  %v802_v50 = vmax.f32 %v1474_v47, 0.0  ;;  %v730_v51 = vpop.f32.mrb[17].mxu1 }
 0x14a   :  { %v755_v52 = vmax.f32 %v500_v49, 0.0  ;;  %v801_v53 = vmax.f32 %v730_v51, 0.0 }
 0x14c   :  { %v1534_v55 = vpack.c.bf16 %v756_v48, %v755_v52  ;;  %v1408_v57 = vpop.f32.mrb[18].mxu0  ;;  %v1923_v58 = vpack.c.bf16 %v802_v50, %v801_v53  ;;  %v811_v52 = vld [vmem:[%s1998_s2 + $0x40] sm:$0xff] }
 0x14d   :  { %v758_v59 = vmax.f32 %v1408_v57, 0.0  ;;  %v510_v60 = vpop.f32.mrb[19].mxu0 }
 0x14e   :  { %v757_v61 = vmax.f32 %v510_v60, 0.0  ;;  %1535 = vmatprep.subr.bf16.mxu1 %v1534_v55 }
 0x14f   :  { %1537 = vmatpush3.bf16.msra.mxu1 %v1891_v34 }
 0x150   :  { %v1538_v62 = vpack.c.bf16 %v758_v59, %v757_v61  ;;  %v1411_v63 = vpop.f32.mrb[20].mxu0  ;;  %v815_v61 = vld [vmem:[%s1998_s2 + $0x60] sm:$0xff] }
 0x151   :  { %v760_v1 = vmax.f32 %v1411_v63, 0.0  ;;  %v520_v3 = vpop.f32.mrb[21].mxu0 }
 0x152   :  { %v759_v4 = vmax.f32 %v520_v3, 0.0  ;;  %1539 = vmatprep.subr.bf16.mxu1 %v1538_v62 }
 0x153   :  { %1541 = vmatpush3.bf16.msra.mxu1 %v1895_v44 }
 0x154   :  { %v1542_v5 = vpack.c.bf16 %v760_v1, %v759_v4  ;;  %v1414_v6 = vpop.f32.mrb[22].mxu0 }
 0x155   :  { %v762_v7 = vmax.f32 %v1414_v6, 0.0  ;;  %v530_v8 = vpop.f32.mrb[23].mxu0 }
 0x156   :  { %v761_v9 = vmax.f32 %v530_v8, 0.0  ;;  %1543 = vmatprep.subr.bf16.mxu1 %v1542_v5 }
 0x157   :  { %1545 = vmatpush3.bf16.msra.mxu1 %v1899_v54 }
 0x158   :  { %v1546_v11 = vpack.c.bf16 %v762_v7, %v761_v9  ;;  %v1417_v13 = vpop.f32.mrb[24].mxu0 }
 0x159   :  { %v764_v14 = vmax.f32 %v1417_v13, 0.0  ;;  %v540_v34 = vpop.f32.mrb[25].mxu0 }
 0x15a   :  { %v763_v15 = vmax.f32 %v540_v34, 0.0  ;;  %1547 = vmatprep.subr.bf16.mxu1 %v1546_v11 }
 0x15b   :  { %1549 = vmatpush3.bf16.msra.mxu1 %v1903_v0 }
 0x15c   :  { %v1550_v16 = vpack.c.bf16 %v764_v14, %v763_v15  ;;  %v1420_v17 = vpop.f32.mrb[26].mxu0 }
 0x15d   :  { %v766_v18 = vmax.f32 %v1420_v17, 0.0  ;;  %v550_v44 = vpop.f32.mrb[27].mxu0  ;;  %v817_v17 = vld [vmem:[%s1998_s2 + $0x70] sm:$0xff] }
 0x15e   :  { %v765_v19 = vmax.f32 %v550_v44, 0.0  ;;  %1551 = vmatprep.subr.bf16.mxu1 %v1550_v16  ;;  %v809_v16 = vld [vmem:[%s1998_s2 + $0x30] sm:$0xff]  ;;  %v1663_v44 = vmov 0.0  }
 0x15f   :  { %1553 = vmatpush3.bf16.msra.mxu1 %v1907_v10 }
 0x160   :  { %v1554_v21 = vpack.c.bf16 %v766_v18, %v765_v19  ;;  %v1423_v23 = vpop.f32.mrb[28].mxu0  ;;  %v1661_v18 = vmov 0.0|0.0  }
 0x161   :  { %v768_v24 = vmax.f32 %v1423_v23, 0.0  ;;  %v560_v54 = vpop.f32.mrb[29].mxu0 }
 0x162   :  { %v767_v25 = vmax.f32 %v560_v54, 0.0  ;;  %1555 = vmatprep.subr.bf16.mxu1 %v1554_v21 }
 0x163   :  { %1557 = vmatpush3.bf16.msra.mxu1 %v1911_v20  ;;  %v803_v20 = vld [vmem:[%s1998_s2] sm:$0xff] }
 0x164   :  { %v1558_v26 = vpack.c.bf16 %v768_v24, %v767_v25  ;;  %v1426_v27 = vpop.f32.mrb[30].mxu0 }
 0x165   :  { %v770_v28 = vmax.f32 %v1426_v27, 0.0  ;;  %v570_v0 = vpop.f32.mrb[31].mxu0 }
 0x166   :  { %v769_v29 = vmax.f32 %v570_v0, 0.0  ;;  %1559 = vmatprep.subr.bf16.mxu1 %v1558_v26 }
 0x167   :  { %1561 = vmatpush3.bf16.msra.mxu1 %v1915_v30  ;;  %v808_v30 = vld [vmem:[%s1998_s2 + $0x28] sm:$0xff] }
 0x168   :  { %v1562_v31 = vpack.c.bf16 %v770_v28, %v769_v29  ;;  %v1429_v33 = vpop.f32.mrb[32].mxu0 }
 0x169   :  { %v772_v35 = vmax.f32 %v1429_v33, 0.0  ;;  %v580_v10 = vpop.f32.mrb[33].mxu0 }
 0x16a   :  { %v771_v37 = vmax.f32 %v580_v10, 0.0  ;;  %1563 = vmatprep.subr.bf16.mxu1 %v1562_v31 }
 0x16b   :  { %1565 = vmatpush3.bf16.msra.mxu1 %v1919_v42  ;;  %v807_v42 = vld [vmem:[%s1998_s2 + $0x20] sm:$0xff] }
 0x16c   :  { %v1568_v38 = vpack.c.bf16 %v772_v35, %v771_v37  ;;  %v1432_v39 = vpop.f32.mrb[34].mxu0  ;;  %1567 = vmatprep.subr.bf16.mxu1 %v1897_v46  ;;  %v812_v46 = vld [vmem:[%s1998_s2 + $0x48] sm:$0xff] }
 0x16d   :  { %v774_v40 = vmax.f32 %v1432_v39, 0.0  ;;  %v590_v41 = vpop.f32.mrb[35].mxu0 }
 0x16e   :  { %v773_v43 = vmax.f32 %v590_v41, 0.0  ;;  %884 = vmatmul.mubr.f32.vlgmr.msra.gmra.mrb[18].mxu1 %v803_v20 }
 0x16f   :  { %1569 = vmatpush3.bf16.msra.mxu1 %v1568_v38  ;;  %888 = vmatprep.mubr.f32.mxu1 %v808_v30 }
 0x170   :  { %v1572_v47 = vpack.c.bf16 %v774_v40, %v773_v43  ;;  %v1435_v48 = vpop.f32.mrb[36].mxu0  ;;  %1571 = vmatprep.subr.bf16.mxu1 %v1901_v56  ;;  %v816_v56 = vld [vmem:[%s1998_s2 + $0x68] sm:$0xff] }
 0x171   :  { %v776_v49 = vmax.f32 %v1435_v48, 0.0  ;;  %v600_v50 = vpop.f32.mrb[37].mxu0 }
 0x172   :  { %v775_v51 = vmax.f32 %v600_v50, 0.0  ;;  %889 = vmatmul.mubr.f32.gmra.mrb[20].mxu1 %v807_v42 }
 0x173   :  { %1573 = vmatpush3.bf16.msra.mxu1 %v1572_v47  ;;  %893 = vmatprep.mubr.f32.mxu1 %v812_v46 }
 0x174   :  { %v1576_v53 = vpack.c.bf16 %v776_v49, %v775_v51  ;;  %v1438_v55 = vpop.f32.mrb[38].mxu0  ;;  %1575 = vmatprep.subr.bf16.mxu1 %v1905_v2  ;;  %v806_v2 = vld [vmem:[%s1998_s2 + $0x18] sm:$0xff] }
 0x175   :  { %v778_v57 = vmax.f32 %v1438_v55, 0.0  ;;  %v610_v59 = vpop.f32.mrb[39].mxu0 }
 0x176   :  { %v777_v60 = vmax.f32 %v610_v59, 0.0  ;;  %894 = vmatmul.mubr.f32.gmra.mrb[22].mxu1 %v811_v52 }
 0x177   :  { %1577 = vmatpush3.bf16.msra.mxu1 %v1576_v53  ;;  %898 = vmatprep.mubr.f32.mxu1 %v816_v56 }
 0x178   :  { %v1580_v62 = vpack.c.bf16 %v778_v57, %v777_v60  ;;  %v1441_v63 = vpop.f32.mrb[40].mxu0  ;;  %1579 = vmatprep.subr.bf16.mxu1 %v1909_v12 }
 0x179   :  { %v780_v1 = vmax.f32 %v1441_v63, 0.0  ;;  %v620_v3 = vpop.f32.mrb[41].mxu0 }
 0x17a   :  { %v779_v4 = vmax.f32 %v620_v3, 0.0  ;;  %899 = vmatmul.mubr.f32.gmra.mrb[24].mxu1 %v815_v61  ;;  %v993_v61 = vld [vmem:[%s1999_s3] sm:$0xff] }
 0x17b   :  { %1581 = vmatpush3.bf16.msra.mxu1 %v1580_v62  ;;  %968 = vmatprep.mubr.f32.mxu1 %v806_v2 }
 0x17c   :  { %v1584_v5 = vpack.c.bf16 %v780_v1, %v779_v4  ;;  %v1444_v6 = vpop.f32.mrb[42].mxu0  ;;  %1583 = vmatprep.subr.bf16.mxu1 %v1913_v22  ;;  %v805_v22 = vld [vmem:[%s1998_s2 + $0x10] sm:$0xff] }
 0x17d   :  { %v782_v7 = vmax.f32 %v1444_v6, 0.0  ;;  %v630_v8 = vpop.f32.mrb[43].mxu0 }
 0x17e   :  { %v781_v9 = vmax.f32 %v630_v8, 0.0 }
 0x17f   :  { %1585 = vmatpush3.bf16.msra.mxu1 %v1584_v5 }
 0x180   :  { %v1588_v11 = vpack.c.bf16 %v782_v7, %v781_v9  ;;  %v1447_v12 = vpop.f32.mrb[44].mxu0  ;;  %1587 = vmatprep.subr.bf16.mxu1 %v1917_v32  ;;  %v810_v32 = vld [vmem:[%s1998_s2 + $0x38] sm:$0xff] }
 0x181   :  { %v784_v13 = vmax.f32 %v1447_v12, 0.0  ;;  %v640_v14 = vpop.f32.mrb[45].mxu0 }
 0x182   :  { %v783_v34 = vmax.f32 %v640_v14, 0.0 }
 0x183   :  { %1589 = vmatpush3.bf16.msra.mxu1 %v1588_v11 }
 0x184   :  { %v1592_v15 = vpack.c.bf16 %v784_v13, %v783_v34  ;;  %1591 = vmatprep.subr.bf16.mxu1 %v1921_v45  ;;  %v814_v45 = vld [vmem:[%s1998_s2 + $0x58] sm:$0xff] }
 0x187   :  { %1593 = vmatpush3.bf16.msra.mxu1 %v1592_v15 }
 0x188   :  { %1595 = vmatprep.subr.bf16.mxu1 %v1923_v58  ;;  %v818_v58 = vld [vmem:[%s1998_s2 + $0x78] sm:$0xff] }
 0x18b   :  { %1597 = vmatpush3.bf16.msra.mxu1 %v1893_v36  ;;  %v813_v36 = vld [vmem:[%s1998_s2 + $0x50] sm:$0xff] }
 0x18c   :  { %1598 = vmatprep.subr.bf16.mxu1 %v1661_v18 }
 0x18e   :  { %969 = vmatmul.mubr.f32.vlgmr.msra.gmra.mrb[26].mxu1 %v805_v22 }
 0x18f   :  { %973 = vmatprep.mubr.f32.mxu1 %v810_v32 }
 0x192   :  { %974 = vmatmul.mubr.f32.gmra.mrb[28].mxu1 %v809_v16 }
 0x193   :  { %978 = vmatprep.mubr.f32.mxu1 %v814_v45 }
 0x196   :  { %979 = vmatmul.mubr.f32.gmra.mrb[30].mxu1 %v813_v36 }
 0x197   :  { %983 = vmatprep.mubr.f32.mxu1 %v818_v58 }
 0x19a   :  { %984 = vmatmul.mubr.f32.gmra.mrb[32].mxu1 %v817_v17 }
 0x19b   :  { %1483 = vmatprep.mubr.msk.f32.mxu1 %vm1662_vm2, %v1663_v44 }
 0x241   :  { %v1286_v19 = vpop.f32.mrb[18].mxu1 }
 0x242   :  { %v1287_v21 = vpop.f32.mrb[19].mxu1 }
 0x243   :  { %v1288_v23 = vadd.f32 %v1287_v21, %v1286_v19 }
 0x245   :  { %v1289_v24 = vpop.f32.mrb[20].mxu1 }
 0x246   :  { %v1290_v54 = vpop.f32.mrb[21].mxu1 }
 0x247   :  { %v1291_v25 = vadd.f32 %v1290_v54, %v1289_v24 }
 0x249   :  { %v1292_v26 = vpop.f32.mrb[22].mxu1 }
 0x24a   :  { %v1293_v27 = vpop.f32.mrb[23].mxu1 }
 0x24b   :  { %v1294_v28 = vadd.f32 %v1293_v27, %v1292_v26 }
 0x24d   :  { %v1295_v0 = vpop.f32.mrb[24].mxu1 }
 0x24e   :  { %v1296_v29 = vpop.f32.mrb[25].mxu1 }
 0x24f   :  { %v1297_v31 = vadd.f32 %v1296_v29, %v1295_v0 }
 0x261   :  { %v1330_v33 = vpop.f32.mrb[26].mxu1 }
 0x262   :  { %v1331_v35 = vpop.f32.mrb[27].mxu1 }
 0x263   :  { %v1332_v10 = vadd.f32 %v1331_v35, %v1330_v33 }
 0x265   :  { %v971_v37 = vadd.f32 %v1332_v10, %v1288_v23  ;;  %v1333_v20 = vpop.f32.mrb[28].mxu1 }
 0x266   :  { %v1334_v38 = vpop.f32.mrb[29].mxu1 }
 0x267   :  { %v989_v39 = vmax.f32 %v971_v37, 0.0  ;;  %v1335_v30 = vadd.f32 %v1334_v38, %v1333_v20 }
 0x269   :  { %v1173_v40 = vmul.f32 -1.442695, %v989_v39  ;;  %v976_v41 = vadd.f32 %v1335_v30, %v1291_v25  ;;  %v1336_v43 = vpop.f32.mrb[30].mxu1 }
 0x26a   :  { %v1337_v42 = vpop.f32.mrb[31].mxu1 }
 0x26b   :  { %1626 = vpow2.f32 %v1173_v40  ;;  %v990_v47 = vmax.f32 %v976_v41, 0.0  ;;  %v1338_v48 = vadd.f32 %v1337_v42, %v1336_v43 }
 0x26d   :  { %v1599_v46 = vpack.c.bf16 %v990_v47, %v989_v39  ;;  %v981_v49 = vadd.f32 %v1338_v48, %v1294_v28  ;;  %v1339_v50 = vpop.f32.mrb[32].mxu1 }
 0x26e   :  { %v1340_v51 = vpop.f32.mrb[33].mxu1 }
 0x26f   :  { %v1341_v52 = vadd.f32 %v1340_v51, %v1339_v50  ;;  %1600 = vmatpush3.bf16.msra.mxu1 %v1599_v46  ;;  %v991_v55 = vmax.f32 %v981_v49, 0.0 }
 0x270   :  { %1601 = vmatprep.subr.bf16.mxu1 %v1661_v18 }
 0x271   :  { %v986_v53 = vadd.f32 %v1341_v52, %v1297_v31 }
 0x273   :  { %v992_v56 = vmax.f32 %v986_v53, 0.0 }
 0x275   :  { %v1627_v57 = vpop.eup %1626  ;;  %v1602_v59 = vpack.c.bf16 %v992_v56, %v991_v55 }
 0x276   :  { %v1078_v60 = vadd.f32 1.0, %v1627_v57 }
 0x277   :  { %1603 = vmatpush3.bf16.msra.mxu1 %v1602_v59 }
 0x278   :  { %1628 = vrcp.f32 %v1078_v60 }
 0x27a   :  { %1484 = vmatmul.mubr.msk.f32.vlgmr.msra.gmra.mrb[34].mxu1 %vm994_vm3, %v993_v61 }
 0x282   :  { %v1629_v62 = vpop.eup %1628 }
 0x283   :  { %1081 = vst [vmem:[%s2001_s5] sm:$0xff] %v1629_v62 }
 0x34d   :  { %v1064_v63 = vpop.f32.mrb[34].mxu1 }
 0x34e   :  { %v1172_v2 = vmul.f32 -1.442695, %v1064_v63  ;;  %v1485_v1 = vpop.f32.mrb[35].mxu1 }
 0x350   :  { %1630 = vpow2.f32 %v1172_v2 }
 0x35a   :  { %v1631_v3 = vpop.eup %1630 }
 0x35b   :  { %v1071_v4 = vadd.f32 1.0, %v1631_v3 }
 0x35d   :  { %1632 = vrcp.f32 %v1071_v4 }
 0x367   :  { %v1633_v5 = vpop.eup %1632 }
 0x368   :  { %1074 = vst [vmem:[%s2000_s4] sm:$0xff] %v1633_v5 }
 0x369   :  { %1090 = vsyncpa [#allocation3], 1 }

</bundles_post_ra>
